<compile_context>
chip_gen: v5e
topology: v5e:2x2
jax: 0.10.0
libtpu: 0.0.40
codegen_flags: <defaults>
</compile_context>

<pallas_src>
import jax
import jax.numpy as jnp
from jax.experimental import pallas as pl
from jax.experimental.pallas import tpu as pltpu


def _l1dist_kernel(x1_ref, x2_ref, o_ref):
    # Pure VPU elementwise op on the current VMEM tile.
    o_ref[...] = jnp.abs(x1_ref[...] - x2_ref[...])


def _vmem_capacity_bytes():
    try:
        cap = int(pltpu.get_tpu_info().vmem_capacity_bytes)
        if cap > 0:
            return cap
    except Exception:
        pass
    # Conservative fallback (v7x-sized): 64 MiB per TensorCore.
    return 64 * 1024 * 1024


def l1_dist(x1, x2, *, min_pallas_bytes=1 << 20):
    """Computes |x1 - x2| elementwise, matching torch.abs(x1 - x2)."""
    assert x1.shape == x2.shape and x1.dtype == x2.dtype
    orig_shape = x1.shape
    dtype = x1.dtype
    itemsize = jnp.dtype(dtype).itemsize
    n = x1.size

    # Tiny inputs: Pallas launch + layout plumbing dwarfs the work.
    if n * itemsize < min_pallas_bytes:
        return jnp.abs(x1 - x2)

    # ---- VMEM-aware budgets (generation dependent) ----------------------
    vmem_cap = _vmem_capacity_bytes()
    # ~2 MiB/buffer on 64 MiB VMEM (v7x), ~4 MiB/buffer on 128 MiB (v5e/v6e).
    tile_budget = min(4 << 20, max(1 << 20, vmem_cap // 32))
    # Raise the scoped-VMEM limit so big tiles compile on v5e/v6e defaults,
    # but keep headroom on v7x's 64 MiB.
    vmem_limit = min((vmem_cap * 3) // 4, 96 << 20)

    # ---- Lane-dense factorization: (rows, W), no padding when possible --
    W = None
    for cand in (2048, 1024, 512, 256, 128):
        r = n // cand
        if n % cand == 0 and r >= 8 and r % 8 == 0:
            W = cand
            break
    pad = 0
    if W is None:
        # Rare fallback (n not a multiple of 1024): pad to a (8, 128) slab.
        W = 128
        blk = 8 * W
        pad = (-n) % blk
    n_pad = n + pad
    rows = n_pad // W  # multiple of 8 by construction

    # ---- Tile rows: multiple of 8, fits budget, keep >=4 grid steps -----
    budget_rows = max(8, (tile_budget // (itemsize * W)) // 8 * 8)
    tile_rows = min(rows, budget_rows)
    if rows >= 32:
        tile_rows = min(tile_rows, max(8, (rows // 4) // 8 * 8))
    grid = (pl.cdiv(rows, tile_rows),)

    # ---- Layout plumbing (free reshapes when pad == 0) -------------------
    x1f = x1.reshape(-1)
    x2f = x2.reshape(-1)
    if pad:
        x1f = jnp.pad(x1f, (0, pad))
        x2f = jnp.pad(x2f, (0, pad))
    x1f = x1f.reshape(rows, W)
    x2f = x2f.reshape(rows, W)

    spec = pl.BlockSpec((tile_rows, W), lambda i: (i, 0))

    out2d = pl.pallas_call(
        _l1dist_kernel,
        out_shape=jax.ShapeDtypeStruct((rows, W), dtype),
        grid_spec=pltpu.PrefetchScalarGridSpec(
            num_scalar_prefetch=0,
            grid=grid,
            in_specs=[spec, spec],
            out_specs=spec,
        ),
        compiler_params=pltpu.CompilerParams(
            dimension_semantics=("parallel",),
            vmem_limit_bytes=vmem_limit,
        ),
        cost_estimate=pl.CostEstimate(
            flops=2 * n,
            transcendentals=0,
            bytes_accessed=3 * n * itemsize,
        ),
    )(x1f, x2f)

    out = out2d.reshape(-1)
    if pad:
        out = out[:n]
    return out.reshape(orig_shape)


if __name__ == "__main__":
    key = jax.random.PRNGKey(0)
    k1, k2, k3, k4 = jax.random.split(key, 4)

    # Small NCHW inputs consistent with the module (siamese embedding maps).
    # Force the Pallas path so the kernel itself is exercised and checked.
    x1 = jax.random.normal(k1, (2, 4, 16, 16), dtype=jnp.float32)
    x2 = jax.random.normal(k2, (2, 4, 16, 16), dtype=jnp.float32)
    out_small = l1_dist(x1, x2, min_pallas_bytes=0)
    jax.block_until_ready(out_small)
    ref_small = jnp.abs(x1 - x2)
    assert out_small.shape == ref_small.shape and out_small.dtype == ref_small.dtype
    assert jnp.allclose(out_small, ref_small), "small-input mismatch vs reference"

    # Larger input exercising the tuned path (wide lanes, ~1 MiB tiles,
    # multi-step parallel grid). 4 MiB per input, no padding needed.
    y1 = jax.random.normal(k3, (4, 32, 64, 128), dtype=jnp.float32)
    y2 = jax.random.normal(k4, (4, 32, 64, 128), dtype=jnp.float32)
    out_big = l1_dist(y1, y2)
    jax.block_until_ready(out_big)
    assert jnp.allclose(out_big, jnp.abs(y1 - y2)), "large-input mismatch vs reference"

    print("KERNEL_OK")
</pallas_src>

<mosaic_0001>
module attributes {stable_mosaic.version = 11 : i64} {
  func.func @_l1dist_kernel(%arg0: i32, %arg1: memref<8x256xf32, #tpu.memory_space<vmem>>, %arg2: memref<8x256xf32, #tpu.memory_space<vmem>>, %arg3: memref<8x256xf32, #tpu.memory_space<vmem>>) attributes {dimension_semantics = [#tpu.dimension_semantics<parallel>], iteration_bounds = array<i64: 1>, scalar_prefetch = 0 : i64, scratch_operands = 0 : i64, tpu.core_type = #tpu.core_type<tc>, window_params = [{transform_indices = @transform_0, window_bounds = array<i64: 8, 256>}, {transform_indices = @transform_1, window_bounds = array<i64: 8, 256>}, {transform_indices = @transform_2, window_bounds = array<i64: 8, 256>}]} {
    %c0 = arith.constant 0 : index
    %c0_0 = arith.constant 0 : index
    %0 = vector.load %arg1[%c0, %c0_0] : memref<8x256xf32, #tpu.memory_space<vmem>>, vector<8x256xf32>
    %c0_1 = arith.constant 0 : index
    %c0_2 = arith.constant 0 : index
    %1 = vector.load %arg2[%c0_1, %c0_2] : memref<8x256xf32, #tpu.memory_space<vmem>>, vector<8x256xf32>
    %2 = arith.subf %0, %1 : vector<8x256xf32>
    %3 = math.absf %2 : vector<8x256xf32>
    %c0_3 = arith.constant 0 : index
    %c0_4 = arith.constant 0 : index
    %4 = vector.load %arg3[%c0_3, %c0_4] : memref<8x256xf32, #tpu.memory_space<vmem>>, vector<8x256xf32>
    tpu.vector_store %arg3[%c0_3, %c0_4], %3 {strides = array<i32>} : memref<8x256xf32, #tpu.memory_space<vmem>>, vector<8x256xf32>,
    return
  }
  func.func @transform_0(%arg0: i32) -> (i32, i32) {
    %c0_i32 = arith.constant 0 : i32
    %c0_i32_0 = arith.constant 0 : i32
    return %arg0, %c0_i32 : i32, i32
  }
  func.func @transform_1(%arg0: i32) -> (i32, i32) {
    %c0_i32 = arith.constant 0 : i32
    %c0_i32_0 = arith.constant 0 : i32
    return %arg0, %c0_i32 : i32, i32
  }
  func.func @transform_2(%arg0: i32) -> (i32, i32) {
    %c0_i32 = arith.constant 0 : i32
    %c0_i32_0 = arith.constant 0 : i32
    return %arg0, %c0_i32 : i32, i32
  }
}

</mosaic_0001>

<bundles_post_ra>
// kernel: tpu_custom_call.1
= control target key start
LH: loop header
LB: loop body
LE: loop exit
PB: predicated region body
PF: predicated region fallthrough
CT: control target
= control target key end

     0   :  { %7 = vsyncpa [#allocation3], 0  ;;  %s176_s0 = inlined_call_operand.hbm [shape: f32[8,256], index: 0, kind: input, shape index: {}]   ;;  %s177_s1 = inlined_call_operand.hbm [shape: f32[8,256], index: 1, kind: input, shape index: {}]   ;;  %s178_s2 = inlined_call_operand.hbm [shape: f32[8,256], index: 2, kind: output, shape index: {}]  }
   0x1   :  { %8 = vsyncpa [#allocation6], 0 }
   0x2   :  { %9 = vsyncpa [#allocation4], 0  ;;  %s15_s11 = sshll.u32 %s176_s0, 4  ;;  %s149_s12 = smov [#allocation2]   ;;  %s16_s11 = int_to_ptr.hbm [resolvable:$true] %s15_s11 }
   0x3   :  { %s17_s13 = sshll.u32 %s149_s12, 4  ;;  %s26_s16 = sshll.u32 %s177_s1, 4  ;;  %s18_s13 = int_to_ptr.vmem [resolvable:$true] %s17_s13  ;;  %s27_s16 = int_to_ptr.hbm [resolvable:$true] %s26_s16 }
   0x4   :  { %20 = dma.hbm_to_vmem [thread:$0]  %s16_s11, 256, %s18_s13, [#allocation3]  }
   0x5   :  { %s150_s17 = smov [#allocation5]  }
   0x6   :  { %s28_s18 = sshll.u32 %s150_s17, 4  ;;  %s29_s18 = int_to_ptr.vmem [resolvable:$true] %s28_s18 }
   0x7   :  { %31 = dma.hbm_to_vmem [thread:$0]  %s27_s16, 256, %s29_s18, [#allocation6]  }
   0x8   :  { %143 = dma.done.wait [#allocation3], 256  }
   0x9   :  { %144 = vsyncadd [#allocation3], 4294967040 }
   0xa   :  { %145 = dma.done.wait [#allocation6], 256  }
   0xb   :  { %146 = vsyncadd [#allocation6], 4294967040  ;;  %v40_v0 = vld [vmem:[#allocation2] sm:$0xff]  ;;  %v42_v1 = vld [vmem:[#allocation5] sm:$0xff]  ;;  %s151_s0 = smov [#allocation7]   ;;  %s57_s1 = sshll.u32 %s178_s2, 4  ;;  %s58_s1 = int_to_ptr.hbm [resolvable:$true] %s57_s1 }
   0xc   :  { %v41_v2 = vld [vmem:[#allocation2 + $0x8] sm:$0xff]  ;;  %v44_v3 = vsub.f32 %v40_v0, %v42_v1  ;;  %v43_v4 = vld [vmem:[#allocation5 + $0x8] sm:$0xff]  ;;  %s55_s19 = sshll.u32 %s151_s0, 4  ;;  %s56_s19 = int_to_ptr.vmem [resolvable:$true] %s55_s19 }
   0xd   :  { %v45_v5 = vsub.f32 %v41_v2, %v43_v4 }
   0xe   :  { %v46_v6 = vand.u32 2147483647, %v44_v3 }
   0xf   :  { %v47_v7 = vand.u32 2147483647, %v45_v5 }
  0x10   :  { %48 = vst [vmem:[#allocation7] sm:$0xff] %v46_v6 }
  0x11   :  { %49 = vst [vmem:[#allocation7 + $0x8] sm:$0xff] %v47_v7 }
  0x12   :  { %60 = dma.vmem_to_hbm [thread:$0]  %s56_s19, 256, %s58_s1, [#allocation4]  }
  0x13   :  { %147 = dma.done.wait [#allocation4], 256  }
  0x14   :  { %148 = vsyncadd [#allocation4], 4294967040 }
  0x15   :  { %65 = vsyncpa [#allocation3], 1 }
  0x16   :  { %66 = vsyncpa [#allocation6], 1 }
  0x17   :  { %67 = vsyncpa [#allocation4], 1 }

</bundles_post_ra>
